<compile_context>
chip_gen: v6e
topology: v6e:2x2x1
jax: 0.10.0
libtpu: 0.0.40
codegen_flags: <defaults>
</compile_context>

<pallas_src>
import functools

import jax
import jax.numpy as jnp
from jax import lax
from jax.experimental import pallas as pl
from jax.experimental.pallas import tpu as pltpu


def uv_encoder_kernel(nodes_ref, hist_uv_ref, hist_r_ref,
                      table_ref, w_ref, b_ref, out_ref,
                      *, n_nodes, n_items):
    """One batch tile: fused gather + mean-pool aggregate + linear + bias + relu."""
    tile_b = nodes_ref.shape[0]
    hist_len = hist_uv_ref.shape[1]
    k_pad = table_ref.shape[0]

    # ---- build the (tile_b, K_pad) selection matrix: [one-hot(nodes) | counts_uv | counts_r]
    # Columns [0, n_nodes): node one-hot; [n_nodes, n_nodes+n_items): item counts;
    # [n_nodes+n_items, ...): rating counts; remaining columns are K padding (stay 0).
    # 1/hist_len is folded into the item/rating rows of the stacked table.
    col = lax.broadcasted_iota(jnp.int32, (tile_b, k_pad), 1)
    g = (nodes_ref[...] == col).astype(jnp.float32)               # node one-hot
    for j in range(hist_len):  # small static trip count; unrolled at trace time
        g = g + (hist_uv_ref[:, j:j + 1] + n_nodes == col).astype(jnp.float32)
        g = g + (hist_r_ref[:, j:j + 1] + (n_nodes + n_items) == col).astype(jnp.float32)
    # counts are exact small integers -> single f32->bf16 cast is lossless.
    g = g.astype(jnp.bfloat16)

    # ---- ONE K=128 MXU pass against the block-diagonal stacked bf16 table:
    # produces cat([self_feats, neigh_feats]) directly (no concat).
    combined = jnp.dot(g, table_ref[...],
                       preferred_element_type=jnp.float32)        # (TB, 2D) f32

    # ---- linear1 (output dim padded to 128 lanes) + bias + relu ----
    y = jnp.dot(combined, w_ref[...],
                preferred_element_type=jnp.float32) + b_ref[...]  # (TB, D_pad)
    out_ref[...] = jnp.maximum(y, 0.0).astype(out_ref.dtype)      # F.relu


def _round_up(x, m):
    return ((x + m - 1) // m) * m


def prepare_uv_encoder_params(features_w, item_w, rating_w, linear1_w, linear1_b,
                              hist_len):
    """One-time parameter prep (outside the per-call path):
      * stack features/item/rating into one block-diagonal bf16 gather table
        with the 1/hist_len mean fold, K padded to a multiple of 128;
      * transpose linear1 and pad its output columns (and bias) to 128 lanes."""
    D = linear1_b.shape[0]
    Nn, Ni, Nr = features_w.shape[0], item_w.shape[0], rating_w.shape[0]
    K = Nn + Ni + Nr
    K_pad = max(128, _round_up(K, 128))
    D_pad = max(128, _round_up(D, 128))

    tbl = jnp.zeros((K_pad, 2 * D), jnp.float32)
    tbl = tbl.at[:Nn, :D].set(features_w.astype(jnp.float32))
    tbl = tbl.at[Nn:Nn + Ni, D:].set(item_w.astype(jnp.float32) / hist_len)
    tbl = tbl.at[Nn + Ni:K, D:].set(rating_w.astype(jnp.float32) / hist_len)
    tbl = tbl.astype(jnp.bfloat16)

    w_pad = jnp.zeros((2 * D, D_pad), jnp.float32)
    w_pad = w_pad.at[:, :D].set(linear1_w.T.astype(jnp.float32))
    b_pad = jnp.zeros((1, D_pad), jnp.float32).at[0, :D].set(linear1_b.astype(jnp.float32))

    return {
        "table": tbl,            # (K_pad, 2D) bf16, VMEM-resident
        "w": w_pad,              # (2D, D_pad) f32
        "bias": b_pad,           # (1, D_pad) f32
        "offsets": (Nn, Ni, Nr),
        "dims": (D, D_pad, K_pad),
        "hist_len": hist_len,
    }


def _pick_tile_b(B):
    """Overhead-aware tile pick: per-grid-step overhead is ~600 cycles, so
    small batches run as ONE step; large batches get >=256-row, multiple-of-16
    tiles (>=2 steps so v7x's two TensorCores both get work)."""
    if B <= 256:
        return B
    for t in (512, 256):
        if B % t == 0 and B // t >= 2:
            return t
    for t in range(min(B // 2, 1024), 255, -16):   # largest mult-of-16 divisor
        if B % t == 0:
            return t
    return B


def uv_encoder_forward(nodes, hist_uv, hist_r, params, *, tile_b=None):
    """Fused UV_Encoder forward.  nodes: (B,), hist_uv/hist_r: (B, L) int32."""
    B = nodes.shape[0]
    L = hist_uv.shape[1]
    D, D_pad, K_pad = params["dims"]
    Nn, Ni, Nr = params["offsets"]

    if tile_b is None:
        tile_b = _pick_tile_b(B)
    assert B % tile_b == 0, "batch must be divisible by tile_b"
    grid = (B // tile_b,)

    nodes2d = nodes.astype(jnp.int32).reshape(B, 1)
    kern = functools.partial(uv_encoder_kernel, n_nodes=Nn, n_items=Ni)

    out_padded = pl.pallas_call(
        kern,
        out_shape=jax.ShapeDtypeStruct((B, D_pad), jnp.float32),
        grid_spec=pltpu.PrefetchScalarGridSpec(
            num_scalar_prefetch=0,
            grid=grid,
            in_specs=[
                pl.BlockSpec((tile_b, 1), lambda i: (i, 0)),   # node ids (batch tile)
                pl.BlockSpec((tile_b, L), lambda i: (i, 0)),   # history item ids
                pl.BlockSpec((tile_b, L), lambda i: (i, 0)),   # history rating ids
                # Constant-index, VMEM-resident inputs: single-buffered.
                pl.BlockSpec((K_pad, 2 * D), lambda i: (0, 0),
                             pipeline_mode=pl.Buffered(1)),    # stacked gather table (bf16)
                pl.BlockSpec((2 * D, D_pad), lambda i: (0, 0),
                             pipeline_mode=pl.Buffered(1)),    # linear1 weight (padded)
                pl.BlockSpec((1, D_pad), lambda i: (0, 0),
                             pipeline_mode=pl.Buffered(1)),    # bias (padded)
            ],
            out_specs=pl.BlockSpec((tile_b, D_pad), lambda i: (i, 0)),  # lane-dense
        ),
        compiler_params=pltpu.CompilerParams(
            dimension_semantics=("parallel",)),
    )(nodes2d, hist_uv.astype(jnp.int32), hist_r.astype(jnp.int32),
      params["table"], params["w"], params["bias"])

    return out_padded[:, :D]   # slice padded lanes back to the model dim


if __name__ == "__main__":
    key = jax.random.PRNGKey(0)
    k_feat, k_item, k_rate, k_w, k_b, k_nodes, k_huv, k_hr = jax.random.split(key, 8)

    num_nodes = 64        # rows in features.weight
    num_items = 48        # rows in the neighbor (item) embedding table
    num_ratings = 5
    embed_dim = 32
    batch = 16            # small -> single grid step (overhead-aware tiling)
    hist_len = 8          # fixed-length synthetic history lists

    # Parameters (deterministic, synthetic — not a checkpoint load)
    features_weight = jax.random.normal(k_feat, (num_nodes, embed_dim), jnp.float32) * 0.1
    item_weight     = jax.random.normal(k_item, (num_items, embed_dim), jnp.float32) * 0.1
    rating_weight   = jax.random.normal(k_rate, (num_ratings, embed_dim), jnp.float32) * 0.1
    linear1_w       = jax.random.normal(k_w, (embed_dim, 2 * embed_dim), jnp.float32) * 0.1
    linear1_b       = jax.random.normal(k_b, (embed_dim,), jnp.float32) * 0.1

    # Inputs: node indices + synthetic fixed-length history_uv_lists / history_r_lists
    # TODO(synk): the PyTorch module indexes Python dicts of ragged lists; here the
    # histories are synthesized as dense fixed-length int arrays (padded/ragged rows
    # would need a per-row valid length instead of the fixed 1/hist_len fold).
    nodes   = jax.random.randint(k_nodes, (batch,), 0, num_nodes, jnp.int32)
    hist_uv = jax.random.randint(k_huv, (batch, hist_len), 0, num_items, jnp.int32)
    hist_r  = jax.random.randint(k_hr, (batch, hist_len), 0, num_ratings, jnp.int32)

    # One-time parameter prep (stack/transpose/pad/cast done outside the call path)
    params = prepare_uv_encoder_params(features_weight, item_weight, rating_weight,
                                       linear1_w, linear1_b, hist_len)

    # Fully fused Pallas kernel: gather + aggregate + linear + bias + relu
    out = uv_encoder_forward(nodes, hist_uv, hist_r, params)
    out = jax.block_until_ready(out)

    # Pure-JAX reference of the UV_Encoder forward (bf16-rounded table values,
    # f32 math) for a correctness check.
    # TODO(synk): the real UV_Aggregator (attention over history) is an external
    # module passed into UV_Encoder; a deterministic mean-pool stands in here.
    feat_f32 = features_weight.astype(jnp.bfloat16).astype(jnp.float32)
    item_f32 = item_weight.astype(jnp.bfloat16).astype(jnp.float32)
    rate_f32 = rating_weight.astype(jnp.bfloat16).astype(jnp.float32)
    self_feats_ref  = feat_f32[nodes]                                           # (B, D)
    neigh_feats_ref = jnp.mean(item_f32[hist_uv] + rate_f32[hist_r], axis=1)    # (B, D)
    combined_ref = jnp.concatenate([self_feats_ref, neigh_feats_ref], axis=1)
    ref = jnp.maximum(combined_ref @ linear1_w.T + linear1_b, 0.0)

    assert out.shape == (batch, embed_dim)
    assert jnp.allclose(out, ref, atol=1e-3, rtol=1e-3), "mismatch vs reference"
    print("KERNEL_OK")
</pallas_src>

<mosaic_0001>
module attributes {stable_mosaic.version = 11 : i64} {
  func.func @uv_encoder_kernel(%arg0: i32, %arg1: memref<16x1xi32, #tpu.memory_space<vmem>>, %arg2: memref<16x8xi32, #tpu.memory_space<vmem>>, %arg3: memref<16x8xi32, #tpu.memory_space<vmem>>, %arg4: memref<128x64xbf16, #tpu.memory_space<vmem>>, %arg5: memref<64x128xf32, #tpu.memory_space<vmem>>, %arg6: memref<1x128xf32, #tpu.memory_space<vmem>>, %arg7: memref<16x128xf32, #tpu.memory_space<vmem>>) attributes {dimension_semantics = [#tpu.dimension_semantics<parallel>], iteration_bounds = array<i64: 1>, scalar_prefetch = 0 : i64, scratch_operands = 0 : i64, tpu.core_type = #tpu.core_type<tc>, window_params = [{transform_indices = @transform_0, window_bounds = array<i64: 16, 1>}, {transform_indices = @transform_1, window_bounds = array<i64: 16, 8>}, {transform_indices = @transform_2, window_bounds = array<i64: 16, 8>}, {pipeline_mode = #tpu.pipeline_mode<synchronous>, transform_indices = @transform_3, window_bounds = array<i64: 128, 64>}, {pipeline_mode = #tpu.pipeline_mode<synchronous>, transform_indices = @transform_4, window_bounds = array<i64: 64, 128>}, {pipeline_mode = #tpu.pipeline_mode<synchronous>, transform_indices = @transform_5, window_bounds = array<i64: 1, 128>}, {transform_indices = @transform_6, window_bounds = array<i64: 16, 128>}]} {
    %0 = tpu.iota {dimensions = array<i32: 1>} : vector<16x128xi32>
    %c0 = arith.constant 0 : index
    %c0_0 = arith.constant 0 : index
    %1 = vector.load %arg1[%c0, %c0_0] : memref<16x1xi32, #tpu.memory_space<vmem>>, vector<16x1xi32>
    %2 = vector.broadcast %1 : vector<16x1xi32> to vector<16x128xi32>
    %3 = arith.cmpi eq, %2, %0 : vector<16x128xi32>
    %4 = arith.extui %3 : vector<16x128xi1> to vector<16x128xi32>
    %5 = arith.sitofp %4 : vector<16x128xi32> to vector<16x128xf32>
    %c0_1 = arith.constant 0 : index
    %c0_2 = arith.constant 0 : index
    %6 = vector.load %arg2[%c0_1, %c0_2] : memref<16x8xi32, #tpu.memory_space<vmem>>, vector<16x1xi32>
    %c64_i32 = arith.constant 64 : i32
    %7 = vector.broadcast %c64_i32 : i32 to vector<16x1xi32>
    %8 = arith.addi %6, %7 : vector<16x1xi32>
    %9 = vector.broadcast %8 : vector<16x1xi32> to vector<16x128xi32>
    %10 = arith.cmpi eq, %9, %0 : vector<16x128xi32>
    %11 = arith.extui %10 : vector<16x128xi1> to vector<16x128xi32>
    %12 = arith.sitofp %11 : vector<16x128xi32> to vector<16x128xf32>
    %13 = arith.addf %5, %12 : vector<16x128xf32>
    %c0_3 = arith.constant 0 : index
    %c0_4 = arith.constant 0 : index
    %14 = vector.load %arg3[%c0_3, %c0_4] : memref<16x8xi32, #tpu.memory_space<vmem>>, vector<16x1xi32>
    %c112_i32 = arith.constant 112 : i32
    %15 = vector.broadcast %c112_i32 : i32 to vector<16x1xi32>
    %16 = arith.addi %14, %15 : vector<16x1xi32>
    %17 = vector.broadcast %16 : vector<16x1xi32> to vector<16x128xi32>
    %18 = arith.cmpi eq, %17, %0 : vector<16x128xi32>
    %19 = arith.extui %18 : vector<16x128xi1> to vector<16x128xi32>
    %20 = arith.sitofp %19 : vector<16x128xi32> to vector<16x128xf32>
    %21 = arith.addf %13, %20 : vector<16x128xf32>
    %c0_5 = arith.constant 0 : index
    %c1 = arith.constant 1 : index
    %22 = vector.load %arg2[%c0_5, %c1] : memref<16x8xi32, #tpu.memory_space<vmem>>, vector<16x1xi32>
    %c64_i32_6 = arith.constant 64 : i32
    %23 = vector.broadcast %c64_i32_6 : i32 to vector<16x1xi32>
    %24 = arith.addi %22, %23 : vector<16x1xi32>
    %25 = vector.broadcast %24 : vector<16x1xi32> to vector<16x128xi32>
    %26 = arith.cmpi eq, %25, %0 : vector<16x128xi32>
    %27 = arith.extui %26 : vector<16x128xi1> to vector<16x128xi32>
    %28 = arith.sitofp %27 : vector<16x128xi32> to vector<16x128xf32>
    %29 = arith.addf %21, %28 : vector<16x128xf32>
    %c0_7 = arith.constant 0 : index
    %c1_8 = arith.constant 1 : index
    %30 = vector.load %arg3[%c0_7, %c1_8] : memref<16x8xi32, #tpu.memory_space<vmem>>, vector<16x1xi32>
    %c112_i32_9 = arith.constant 112 : i32
    %31 = vector.broadcast %c112_i32_9 : i32 to vector<16x1xi32>
    %32 = arith.addi %30, %31 : vector<16x1xi32>
    %33 = vector.broadcast %32 : vector<16x1xi32> to vector<16x128xi32>
    %34 = arith.cmpi eq, %33, %0 : vector<16x128xi32>
    %35 = arith.extui %34 : vector<16x128xi1> to vector<16x128xi32>
    %36 = arith.sitofp %35 : vector<16x128xi32> to vector<16x128xf32>
    %37 = arith.addf %29, %36 : vector<16x128xf32>
    %c0_10 = arith.constant 0 : index
    %c2 = arith.constant 2 : index
    %38 = vector.load %arg2[%c0_10, %c2] : memref<16x8xi32, #tpu.memory_space<vmem>>, vector<16x1xi32>
    %c64_i32_11 = arith.constant 64 : i32
    %39 = vector.broadcast %c64_i32_11 : i32 to vector<16x1xi32>
    %40 = arith.addi %38, %39 : vector<16x1xi32>
    %41 = vector.broadcast %40 : vector<16x1xi32> to vector<16x128xi32>
    %42 = arith.cmpi eq, %41, %0 : vector<16x128xi32>
    %43 = arith.extui %42 : vector<16x128xi1> to vector<16x128xi32>
    %44 = arith.sitofp %43 : vector<16x128xi32> to vector<16x128xf32>
    %45 = arith.addf %37, %44 : vector<16x128xf32>
    %c0_12 = arith.constant 0 : index
    %c2_13 = arith.constant 2 : index
    %46 = vector.load %arg3[%c0_12, %c2_13] : memref<16x8xi32, #tpu.memory_space<vmem>>, vector<16x1xi32>
    %c112_i32_14 = arith.constant 112 : i32
    %47 = vector.broadcast %c112_i32_14 : i32 to vector<16x1xi32>
    %48 = arith.addi %46, %47 : vector<16x1xi32>
    %49 = vector.broadcast %48 : vector<16x1xi32> to vector<16x128xi32>
    %50 = arith.cmpi eq, %49, %0 : vector<16x128xi32>
    %51 = arith.extui %50 : vector<16x128xi1> to vector<16x128xi32>
    %52 = arith.sitofp %51 : vector<16x128xi32> to vector<16x128xf32>
    %53 = arith.addf %45, %52 : vector<16x128xf32>
    %c0_15 = arith.constant 0 : index
    %c3 = arith.constant 3 : index
    %54 = vector.load %arg2[%c0_15, %c3] : memref<16x8xi32, #tpu.memory_space<vmem>>, vector<16x1xi32>
    %c64_i32_16 = arith.constant 64 : i32
    %55 = vector.broadcast %c64_i32_16 : i32 to vector<16x1xi32>
    %56 = arith.addi %54, %55 : vector<16x1xi32>
    %57 = vector.broadcast %56 : vector<16x1xi32> to vector<16x128xi32>
    %58 = arith.cmpi eq, %57, %0 : vector<16x128xi32>
    %59 = arith.extui %58 : vector<16x128xi1> to vector<16x128xi32>
    %60 = arith.sitofp %59 : vector<16x128xi32> to vector<16x128xf32>
    %61 = arith.addf %53, %60 : vector<16x128xf32>
    %c0_17 = arith.constant 0 : index
    %c3_18 = arith.constant 3 : index
    %62 = vector.load %arg3[%c0_17, %c3_18] : memref<16x8xi32, #tpu.memory_space<vmem>>, vector<16x1xi32>
    %c112_i32_19 = arith.constant 112 : i32
    %63 = vector.broadcast %c112_i32_19 : i32 to vector<16x1xi32>
    %64 = arith.addi %62, %63 : vector<16x1xi32>
    %65 = vector.broadcast %64 : vector<16x1xi32> to vector<16x128xi32>
    %66 = arith.cmpi eq, %65, %0 : vector<16x128xi32>
    %67 = arith.extui %66 : vector<16x128xi1> to vector<16x128xi32>
    %68 = arith.sitofp %67 : vector<16x128xi32> to vector<16x128xf32>
    %69 = arith.addf %61, %68 : vector<16x128xf32>
    %c0_20 = arith.constant 0 : index
    %c4 = arith.constant 4 : index
    %70 = vector.load %arg2[%c0_20, %c4] : memref<16x8xi32, #tpu.memory_space<vmem>>, vector<16x1xi32>
    %c64_i32_21 = arith.constant 64 : i32
    %71 = vector.broadcast %c64_i32_21 : i32 to vector<16x1xi32>
    %72 = arith.addi %70, %71 : vector<16x1xi32>
    %73 = vector.broadcast %72 : vector<16x1xi32> to vector<16x128xi32>
    %74 = arith.cmpi eq, %73, %0 : vector<16x128xi32>
    %75 = arith.extui %74 : vector<16x128xi1> to vector<16x128xi32>
    %76 = arith.sitofp %75 : vector<16x128xi32> to vector<16x128xf32>
    %77 = arith.addf %69, %76 : vector<16x128xf32>
    %c0_22 = arith.constant 0 : index
    %c4_23 = arith.constant 4 : index
    %78 = vector.load %arg3[%c0_22, %c4_23] : memref<16x8xi32, #tpu.memory_space<vmem>>, vector<16x1xi32>
    %c112_i32_24 = arith.constant 112 : i32
    %79 = vector.broadcast %c112_i32_24 : i32 to vector<16x1xi32>
    %80 = arith.addi %78, %79 : vector<16x1xi32>
    %81 = vector.broadcast %80 : vector<16x1xi32> to vector<16x128xi32>
    %82 = arith.cmpi eq, %81, %0 : vector<16x128xi32>
    %83 = arith.extui %82 : vector<16x128xi1> to vector<16x128xi32>
    %84 = arith.sitofp %83 : vector<16x128xi32> to vector<16x128xf32>
    %85 = arith.addf %77, %84 : vector<16x128xf32>
    %c0_25 = arith.constant 0 : index
    %c5 = arith.constant 5 : index
    %86 = vector.load %arg2[%c0_25, %c5] : memref<16x8xi32, #tpu.memory_space<vmem>>, vector<16x1xi32>
    %c64_i32_26 = arith.constant 64 : i32
    %87 = vector.broadcast %c64_i32_26 : i32 to vector<16x1xi32>
    %88 = arith.addi %86, %87 : vector<16x1xi32>
    %89 = vector.broadcast %88 : vector<16x1xi32> to vector<16x128xi32>
    %90 = arith.cmpi eq, %89, %0 : vector<16x128xi32>
    %91 = arith.extui %90 : vector<16x128xi1> to vector<16x128xi32>
    %92 = arith.sitofp %91 : vector<16x128xi32> to vector<16x128xf32>
    %93 = arith.addf %85, %92 : vector<16x128xf32>
    %c0_27 = arith.constant 0 : index
    %c5_28 = arith.constant 5 : index
    %94 = vector.load %arg3[%c0_27, %c5_28] : memref<16x8xi32, #tpu.memory_space<vmem>>, vector<16x1xi32>
    %c112_i32_29 = arith.constant 112 : i32
    %95 = vector.broadcast %c112_i32_29 : i32 to vector<16x1xi32>
    %96 = arith.addi %94, %95 : vector<16x1xi32>
    %97 = vector.broadcast %96 : vector<16x1xi32> to vector<16x128xi32>
    %98 = arith.cmpi eq, %97, %0 : vector<16x128xi32>
    %99 = arith.extui %98 : vector<16x128xi1> to vector<16x128xi32>
    %100 = arith.sitofp %99 : vector<16x128xi32> to vector<16x128xf32>
    %101 = arith.addf %93, %100 : vector<16x128xf32>
    %c0_30 = arith.constant 0 : index
    %c6 = arith.constant 6 : index
    %102 = vector.load %arg2[%c0_30, %c6] : memref<16x8xi32, #tpu.memory_space<vmem>>, vector<16x1xi32>
    %c64_i32_31 = arith.constant 64 : i32
    %103 = vector.broadcast %c64_i32_31 : i32 to vector<16x1xi32>
    %104 = arith.addi %102, %103 : vector<16x1xi32>
    %105 = vector.broadcast %104 : vector<16x1xi32> to vector<16x128xi32>
    %106 = arith.cmpi eq, %105, %0 : vector<16x128xi32>
    %107 = arith.extui %106 : vector<16x128xi1> to vector<16x128xi32>
    %108 = arith.sitofp %107 : vector<16x128xi32> to vector<16x128xf32>
    %109 = arith.addf %101, %108 : vector<16x128xf32>
    %c0_32 = arith.constant 0 : index
    %c6_33 = arith.constant 6 : index
    %110 = vector.load %arg3[%c0_32, %c6_33] : memref<16x8xi32, #tpu.memory_space<vmem>>, vector<16x1xi32>
    %c112_i32_34 = arith.constant 112 : i32
    %111 = vector.broadcast %c112_i32_34 : i32 to vector<16x1xi32>
    %112 = arith.addi %110, %111 : vector<16x1xi32>
    %113 = vector.broadcast %112 : vector<16x1xi32> to vector<16x128xi32>
    %114 = arith.cmpi eq, %113, %0 : vector<16x128xi32>
    %115 = arith.extui %114 : vector<16x128xi1> to vector<16x128xi32>
    %116 = arith.sitofp %115 : vector<16x128xi32> to vector<16x128xf32>
    %117 = arith.addf %109, %116 : vector<16x128xf32>
    %c0_35 = arith.constant 0 : index
    %c7 = arith.constant 7 : index
    %118 = vector.load %arg2[%c0_35, %c7] : memref<16x8xi32, #tpu.memory_space<vmem>>, vector<16x1xi32>
    %c64_i32_36 = arith.constant 64 : i32
    %119 = vector.broadcast %c64_i32_36 : i32 to vector<16x1xi32>
    %120 = arith.addi %118, %119 : vector<16x1xi32>
    %121 = vector.broadcast %120 : vector<16x1xi32> to vector<16x128xi32>
    %122 = arith.cmpi eq, %121, %0 : vector<16x128xi32>
    %123 = arith.extui %122 : vector<16x128xi1> to vector<16x128xi32>
    %124 = arith.sitofp %123 : vector<16x128xi32> to vector<16x128xf32>
    %125 = arith.addf %117, %124 : vector<16x128xf32>
    %c0_37 = arith.constant 0 : index
    %c7_38 = arith.constant 7 : index
    %126 = vector.load %arg3[%c0_37, %c7_38] : memref<16x8xi32, #tpu.memory_space<vmem>>, vector<16x1xi32>
    %c112_i32_39 = arith.constant 112 : i32
    %127 = vector.broadcast %c112_i32_39 : i32 to vector<16x1xi32>
    %128 = arith.addi %126, %127 : vector<16x1xi32>
    %129 = vector.broadcast %128 : vector<16x1xi32> to vector<16x128xi32>
    %130 = arith.cmpi eq, %129, %0 : vector<16x128xi32>
    %131 = arith.extui %130 : vector<16x128xi1> to vector<16x128xi32>
    %132 = arith.sitofp %131 : vector<16x128xi32> to vector<16x128xf32>
    %133 = arith.addf %125, %132 : vector<16x128xf32>
    %134 = arith.truncf %133 : vector<16x128xf32> to vector<16x128xbf16>
    %c0_40 = arith.constant 0 : index
    %c0_41 = arith.constant 0 : index
    %135 = vector.load %arg4[%c0_40, %c0_41] : memref<128x64xbf16, #tpu.memory_space<vmem>>, vector<128x64xbf16>
    %cst = arith.constant dense<0.000000e+00> : vector<16x64xf32>
    %136 = tpu.matmul %134, %135, %cst {dimension_numbers = #tpu.dot_dimension_numbers<[1], [0], [0], [1], [0, 0, 1, 1], [], []>} : vector<16x128xbf16>, vector<128x64xbf16>, vector<16x64xf32> -> vector<16x64xf32>
    %c0_42 = arith.constant 0 : index
    %c0_43 = arith.constant 0 : index
    %137 = vector.load %arg5[%c0_42, %c0_43] : memref<64x128xf32, #tpu.memory_space<vmem>>, vector<64x128xf32>
    %cst_44 = arith.constant dense<0.000000e+00> : vector<16x128xf32>
    %138 = tpu.matmul %136, %137, %cst_44 {dimension_numbers = #tpu.dot_dimension_numbers<[1], [0], [0], [1], [0, 0, 1, 1], [], []>} : vector<16x64xf32>, vector<64x128xf32>, vector<16x128xf32> -> vector<16x128xf32>
    %c0_45 = arith.constant 0 : index
    %c0_46 = arith.constant 0 : index
    %139 = vector.load %arg6[%c0_45, %c0_46] : memref<1x128xf32, #tpu.memory_space<vmem>>, vector<1x128xf32>
    %140 = vector.broadcast %139 : vector<1x128xf32> to vector<16x128xf32>
    %141 = arith.addf %138, %140 : vector<16x128xf32>
    %cst_47 = arith.constant 0.000000e+00 : f32
    %142 = vector.broadcast %cst_47 : f32 to vector<16x128xf32>
    %143 = arith.maximumf %141, %142 : vector<16x128xf32>
    %c0_48 = arith.constant 0 : index
    %c0_49 = arith.constant 0 : index
    %144 = vector.load %arg7[%c0_48, %c0_49] : memref<16x128xf32, #tpu.memory_space<vmem>>, vector<16x128xf32>
    tpu.vector_store %arg7[%c0_48, %c0_49], %143 {strides = array<i32>} : memref<16x128xf32, #tpu.memory_space<vmem>>, vector<16x128xf32>,
    return
  }
  func.func @transform_0(%arg0: i32) -> (i32, i32) {
    %c0_i32 = arith.constant 0 : i32
    %c0_i32_0 = arith.constant 0 : i32
    return %arg0, %c0_i32 : i32, i32
  }
  func.func @transform_1(%arg0: i32) -> (i32, i32) {
    %c0_i32 = arith.constant 0 : i32
    %c0_i32_0 = arith.constant 0 : i32
    return %arg0, %c0_i32 : i32, i32
  }
  func.func @transform_2(%arg0: i32) -> (i32, i32) {
    %c0_i32 = arith.constant 0 : i32
    %c0_i32_0 = arith.constant 0 : i32
    return %arg0, %c0_i32 : i32, i32
  }
  func.func @transform_3(%arg0: i32) -> (i32, i32) {
    %c0_i32 = arith.constant 0 : i32
    %c0_i32_0 = arith.constant 0 : i32
    %c0_i32_1 = arith.constant 0 : i32
    return %c0_i32, %c0_i32_0 : i32, i32
  }
  func.func @transform_4(%arg0: i32) -> (i32, i32) {
    %c0_i32 = arith.constant 0 : i32
    %c0_i32_0 = arith.constant 0 : i32
    %c0_i32_1 = arith.constant 0 : i32
    return %c0_i32, %c0_i32_0 : i32, i32
  }
  func.func @transform_5(%arg0: i32) -> (i32, i32) {
    %c0_i32 = arith.constant 0 : i32
    %c0_i32_0 = arith.constant 0 : i32
    %c0_i32_1 = arith.constant 0 : i32
    return %c0_i32, %c0_i32_0 : i32, i32
  }
  func.func @transform_6(%arg0: i32) -> (i32, i32) {
    %c0_i32 = arith.constant 0 : i32
    %c0_i32_0 = arith.constant 0 : i32
    return %arg0, %c0_i32 : i32, i32
  }
}

</mosaic_0001>

<bundles_post_ra>
// kernel: tpu_custom_call.1
= control target key start
LH: loop header
LB: loop body
LE: loop exit
PB: predicated region body
PF: predicated region fallthrough
CT: control target
= control target key end

     0   :  { %v658_v2 = vmov 0   ;;  %v659_v11 = vmov 0.0   ;;  %s897_s0 = inlined_call_operand.vmem [shape: s32[16,1], index: 0, kind: input, shape index: {}]   ;;  %s898_s1 = inlined_call_operand.vmem [shape: s32[16,8], index: 1, kind: input, shape index: {}]   ;;  %s899_s2 = inlined_call_operand.vmem [shape: s32[16,8], index: 2, kind: input, shape index: {}]   ;;  %s900_s3 = inlined_call_operand.vmem [shape: bf16[128,64], index: 3, kind: input, shape index: {}]   ;;  %s901_s4 = inlined_call_operand.vmem [shape: f32[64,128], index: 4, kind: input, shape index: {}]   ;;  %s902_s5 = inlined_call_operand.vmem [shape: f32[1,128], index: 5, kind: input, shape index: {}]   ;;  %s903_s6 = inlined_call_operand.hbm [shape: f32[16,128], index: 6, kind: output, shape index: {}]  }
   0x1   :  { %v27_v0 = vld [vmem:[%s897_s0] sm:$0xff]  ;;  %612 = vset.pattern.permute.xlu0 %v658_v2  ;;  %613 = vset.pattern.permute.xlu1 %v658_v2  ;;  %v42_v4 = vld [vmem:[%s898_s1 + $0x8] sm:$0xff] }
   0x2   :  { %v41_v1 = vld [vmem:[%s898_s1] sm:$0xff]  ;;  %v60_v6 = vld [vmem:[%s899_s2 + $0x8] sm:$0xff]  ;;  %30 = vperm.xlu0 %612, %v27_v0   ;;  %v727_v8 = vadd.s32 64, %v42_v4  ;;  %560 = vmatprep.subr.bf16.mxu0 %v659_v11 }
   0x3   :  { %v712_v3 = vadd.s32 64, %v41_v1  ;;  %v59_v5 = vld [vmem:[%s899_s2] sm:$0xff]  ;;  %v28_v7 = vld [vmem:[%s897_s0 + $0x8] sm:$0xff]  ;;  %v731_v10 = vadd.s32 112, %v60_v6 }
   0x4   :  { %v729_v9 = vadd.s32 112, %v59_v5 }
   0x5   :  { %46 = vperm.xlu1 %613, %v712_v3  }
   0x6   :  { %33 = vperm.xlu0 %612, %v28_v7  }
   0x9   :  { %49 = vperm.xlu1 %613, %v727_v8  }
   0xa   :  { %11 = vsyncpa [#allocation3], 0  ;;  %64 = vperm.xlu0 %612, %v729_v9   ;;  %v660_v12 = vmov 1   ;;  %v661_v13 = vmov 2   ;;  %v662_v14 = vmov 3   ;;  %v663_v15 = vmov 4  }
   0xb   :  { %v664_v16 = vmov 5   ;;  %v665_v17 = vmov 6   ;;  %v628_v18 = vld [vmem:[%s900_s3 + $0x38] sm:$0xff]   ;;  %v666_v19 = vmov 7   ;;  %v629_v20 = vld [vmem:[%s900_s3 + $0x30] sm:$0xff]   ;;  %v630_v21 = vld [vmem:[%s900_s3 + $0x28] sm:$0xff]   ;;  %v25_v45 = vlaneseq }
   0xc   :  { %561 = vmatpush3.bf16.msra.mxu0 %v628_v18  ;;  %v631_v22 = vld [vmem:[%s900_s3 + $0x20] sm:$0xff]   ;;  %v632_v23 = vld [vmem:[%s900_s3 + $0x18] sm:$0xff]   ;;  %v633_v24 = vld [vmem:[%s900_s3 + $0x10] sm:$0xff]   ;;  %vm667_vm0 = vmmov 0   ;;  %s668_s12 = smov [#allocation2]  }
   0xd   :  { %67 = vperm.xlu1 %613, %v731_v10   ;;  %562 = vmatprep.subr.bf16.mxu0 %v659_v11  ;;  %v634_v25 = vld [vmem:[%s900_s3 + $0x8] sm:$0xff]   ;;  %v635_v26 = vld [vmem:[%s900_s3] sm:$0xff]   ;;  %v386_v27 = vld [vmem:[%s901_s4 + $0x38] sm:$0xff]  ;;  %v815_v48 = vand.u32 127, %v25_v45  ;;  %s485_s13 = sshll.u32 %s668_s12, 4  ;;  %s486_s13 = int_to_ptr.vmem [resolvable:$true] %s485_s13 }
   0xe   :  { %614 = vset.pattern.permute.xlu0 %v660_v12  ;;  %576 = vmatprep.mubr.msk.bf16.mxu0 %vm667_vm0, %v659_v11  ;;  %v385_v28 = vld [vmem:[%s901_s4 + $0x30] sm:$0xff]  ;;  %v384_v29 = vld [vmem:[%s901_s4 + $0x28] sm:$0xff]  ;;  %v383_v30 = vld [vmem:[%s901_s4 + $0x20] sm:$0xff]  ;;  %p641_p1 = scmp.lt.s32.totalorder %s486_s13, %s486_s13 }
   0xf   :  { %78 = vperm.xlu0 %614, %v712_v3   ;;  %580 = vmatprep.subr.mxu1 %v386_v27  ;;  %v382_v31 = vld [vmem:[%s901_s4 + $0x18] sm:$0xff]  ;;  %v381_v32 = vld [vmem:[%s901_s4 + $0x10] sm:$0xff] }
  0x10   :  { %563 = vmatpush3.bf16.msra.mxu0 %v629_v20  ;;  %581 = vmatpush3.msra.mxu1 %v386_v27 }
  0x11   :  { %615 = vset.pattern.permute.xlu1 %v660_v12  ;;  %564 = vmatprep.subr.bf16.mxu0 %v659_v11 }
  0x12   :  { %81 = vperm.xlu1 %615, %v727_v8   ;;  %582 = vmatprep.subr.mxu1 %v385_v28 }
  0x13   :  { %95 = vperm.xlu0 %614, %v731_v10   ;;  %583 = vmatpush3.msra.mxu1 %v385_v28 }
  0x14   :  { %565 = vmatpush3.bf16.msra.mxu0 %v630_v21  ;;  %584 = vmatprep.subr.mxu1 %v384_v29 }
  0x15   :  { %566 = vmatprep.subr.bf16.mxu0 %v659_v11  ;;  %585 = vmatpush3.msra.mxu1 %v384_v29 }
  0x16   :  { %92 = vperm.xlu1 %615, %v729_v9   ;;  %586 = vmatprep.subr.mxu1 %v383_v30 }
  0x17   :  { %617 = vset.pattern.permute.xlu0 %v661_v13  ;;  %587 = vmatpush3.msra.mxu1 %v383_v30 }
  0x18   :  { %109 = vperm.xlu0 %617, %v727_v8   ;;  %567 = vmatpush3.bf16.msra.mxu0 %v631_v22 }
  0x19   :  { %568 = vmatprep.subr.bf16.mxu0 %v659_v11  ;;  %588 = vmatprep.subr.mxu1 %v382_v31 }
  0x1a   :  { %616 = vset.pattern.permute.xlu1 %v661_v13  ;;  %589 = vmatpush3.msra.mxu1 %v382_v31 }
  0x1b   :  { %106 = vperm.xlu1 %616, %v712_v3   ;;  %590 = vmatprep.subr.mxu1 %v381_v32 }
  0x1c   :  { %618 = vset.pattern.permute.xlu0 %v662_v14  ;;  %569 = vmatpush3.bf16.msra.mxu0 %v632_v23 }
  0x1d   :  { %134 = vperm.xlu0 %618, %v712_v3   ;;  %570 = vmatprep.subr.bf16.mxu0 %v659_v11 }
  0x1e   :  { %591 = vmatpush3.msra.mxu1 %v381_v32 }
  0x1f   :  { %120 = vperm.xlu1 %616, %v729_v9  }
  0x20   :  { %571 = vmatpush3.bf16.msra.mxu0 %v633_v24 }
  0x21   :  { %151 = vperm.xlu0 %618, %v731_v10   ;;  %572 = vmatprep.subr.bf16.mxu0 %v659_v11 }
  0x23   :  { %123 = vperm.xlu1 %616, %v731_v10  }
  0x24   :  { %573 = vmatpush3.bf16.msra.mxu0 %v634_v25 }
  0x25   :  { %621 = vset.pattern.permute.xlu0 %v663_v15  ;;  %574 = vmatprep.subr.bf16.mxu0 %v659_v11 }
  0x26   :  { %165 = vperm.xlu0 %621, %v727_v8  }
  0x27   :  { %619 = vset.pattern.permute.xlu1 %v662_v14 }
  0x28   :  { %137 = vperm.xlu1 %619, %v727_v8   ;;  %575 = vmatpush3.bf16.msra.mxu0 %v635_v26 }
  0x2a   :  { %622 = vset.pattern.permute.xlu0 %v664_v16 }
  0x2b   :  { %190 = vperm.xlu0 %622, %v712_v3  }
  0x2c   :  { %148 = vperm.xlu1 %619, %v729_v9  }
  0x2f   :  { %207 = vperm.xlu0 %622, %v731_v10  }
  0x30   :  { %620 = vset.pattern.permute.xlu1 %v663_v15 }
  0x31   :  { %162 = vperm.xlu1 %620, %v712_v3  }
  0x33   :  { %625 = vset.pattern.permute.xlu0 %v665_v17 }
  0x34   :  { %221 = vperm.xlu0 %625, %v727_v8  }
  0x35   :  { %176 = vperm.xlu1 %620, %v729_v9  }
  0x38   :  { %626 = vset.pattern.permute.xlu0 %v666_v19 }
  0x39   :  { %179 = vperm.xlu1 %620, %v731_v10   ;;  %246 = vperm.xlu0 %626, %v712_v3  }
  0x3d   :  { %623 = vset.pattern.permute.xlu1 %v664_v16  ;;  %263 = vperm.xlu0 %626, %v731_v10  }
  0x3e   :  { %193 = vperm.xlu1 %623, %v727_v8  }
  0x42   :  { %204 = vperm.xlu1 %623, %v729_v9  }
  0x46   :  { %624 = vset.pattern.permute.xlu1 %v665_v17 }
  0x47   :  { %218 = vperm.xlu1 %624, %v712_v3  }
  0x4b   :  { %232 = vperm.xlu1 %624, %v729_v9  }
  0x4f   :  { %235 = vperm.xlu1 %624, %v731_v10  }
  0x53   :  { %627 = vset.pattern.permute.xlu1 %v666_v19 }
  0x54   :  { %249 = vperm.xlu1 %627, %v727_v8  }
  0x58   :  { %260 = vperm.xlu1 %627, %v729_v9  }
  0x7d   :  { %v31_v36 = vpop.permute.xlu0 %30 }
  0x7e   :  { %vm35_vm5 = vcmp.eq.s32.totalorder %v31_v36, %v815_v48 }
  0x7f   :  { %v496_v59 = vsel %vm35_vm5, 1.0, %v659_v11 }
  0x80   :  { %v47_v33 = vpop.permute.xlu1 %46 }
  0x81   :  { %v34_v38 = vpop.permute.xlu0 %33  ;;  %vm51_vm6 = vcmp.eq.s32.totalorder %v47_v33, %v815_v48 }
  0x82   :  { %vm36_vm1 = vcmp.eq.s32.totalorder %v34_v38, %v815_v48  ;;  %v498_v60 = vsel %vm51_vm6, 1.0, %v659_v11 }
  0x83   :  { %v497_v50 = vsel %vm36_vm1, 1.0, %v659_v11  ;;  %v57_v2 = vadd.f32 %v498_v60, %v496_v59 }
  0x84   :  { %v50_v34 = vpop.permute.xlu1 %49 }
  0x85   :  { %v65_v41 = vpop.permute.xlu0 %64  ;;  %vm52_vm2 = vcmp.eq.s32.totalorder %v50_v34, %v815_v48 }
  0x86   :  { %v499_v51 = vsel %vm52_vm2, 1.0, %v659_v11  ;;  %vm69_vm7 = vcmp.eq.s32.totalorder %v65_v41, %v815_v48 }
  0x87   :  { %v58_v54 = vadd.f32 %v499_v51, %v497_v50  ;;  %v500_v63 = vsel %vm69_vm7, 1.0, %v659_v11 }
  0x88   :  { %v68_v35 = vpop.permute.xlu1 %67  ;;  %v75_v5 = vadd.f32 %v500_v63, %v57_v2 }
  0x89   :  { %vm70_vm3 = vcmp.eq.s32.totalorder %v68_v35, %v815_v48 }
  0x8a   :  { %v79_v43 = vpop.permute.xlu0 %78  ;;  %v501_v53 = vsel %vm70_vm3, 1.0, %v659_v11 }
  0x8b   :  { %v76_v58 = vadd.f32 %v501_v53, %v58_v54  ;;  %vm83_vm9 = vcmp.eq.s32.totalorder %v79_v43, %v815_v48 }
  0x8c   :  { %v502_v3 = vsel %vm83_vm9, 1.0, %v659_v11 }
  0x8d   :  { %v82_v37 = vpop.permute.xlu1 %81  ;;  %v89_v10 = vadd.f32 %v502_v3, %v75_v5 }
  0x8e   :  { %v96_v46 = vpop.permute.xlu0 %95  ;;  %vm84_vm4 = vcmp.eq.s32.totalorder %v82_v37, %v815_v48 }
  0x8f   :  { %v503_v56 = vsel %vm84_vm4, 1.0, %v659_v11  ;;  %vm98_vm8 = vcmp.eq.s32.totalorder %v96_v46, %v815_v48 }
  0x90   :  { %v90_v61 = vadd.f32 %v503_v56, %v76_v58  ;;  %v505_v0 = vsel %vm98_vm8, 1.0, %v659_v11 }
  0x91   :  { %v93_v39 = vpop.permute.xlu1 %92 }
  0x92   :  { %vm97_vm11 = vcmp.eq.s32.totalorder %v93_v39, %v815_v48  ;;  %v104_v6 = vadd.f32 %v505_v0, %v90_v61 }
  0x93   :  { %v110_v52 = vpop.permute.xlu0 %109  ;;  %v504_v8 = vsel %vm97_vm11, 1.0, %v659_v11 }
  0x94   :  { %vm112_vm10 = vcmp.eq.s32.totalorder %v110_v52, %v815_v48  ;;  %v103_v16 = vadd.f32 %v504_v8, %v89_v10  ;;  %v380_v10 = vld [vmem:[%s901_s4 + $0x8] sm:$0xff] }
  0x95   :  { %v507_v4 = vsel %vm112_vm10, 1.0, %v659_v11  ;;  %592 = vmatprep.subr.mxu1 %v380_v10 }
  0x96   :  { %v107_v40 = vpop.permute.xlu1 %106  ;;  %v118_v12 = vadd.f32 %v507_v4, %v104_v6  ;;  %593 = vmatpush3.msra.mxu1 %v380_v10 }
  0x97   :  { %vm111_vm13 = vcmp.eq.s32.totalorder %v107_v40, %v815_v48 }
  0x98   :  { %v135_v57 = vpop.permute.xlu0 %134  ;;  %v506_v13 = vsel %vm111_vm13, 1.0, %v659_v11 }
  0x99   :  { %v117_v20 = vadd.f32 %v506_v13, %v103_v16  ;;  %vm139_vm1 = vcmp.eq.s32.totalorder %v135_v57, %v815_v48 }
  0x9a   :  { %v121_v42 = vpop.permute.xlu1 %120  ;;  %v510_v25 = vsel %vm139_vm1, 1.0, %v659_v11 }
  0x9b   :  { %vm125_vm15 = vcmp.eq.s32.totalorder %v121_v42, %v815_v48 }
  0x9c   :  { %v152_v1 = vpop.permute.xlu0 %151  ;;  %v508_v18 = vsel %vm125_vm15, 1.0, %v659_v11 }
  0x9d   :  { %vm154_vm0 = vcmp.eq.s32.totalorder %v152_v1, %v815_v48  ;;  %v131_v24 = vadd.f32 %v508_v18, %v117_v20 }
  0x9e   :  { %v124_v44 = vpop.permute.xlu1 %123  ;;  %v513_v22 = vsel %vm154_vm0, 1.0, %v659_v11 }
  0x9f   :  { %vm126_vm12 = vcmp.eq.s32.totalorder %v124_v44, %v815_v48  ;;  %v145_v31 = vadd.f32 %v510_v25, %v131_v24 }
  0xa0   :  { %v509_v9 = vsel %vm126_vm12, 1.0, %v659_v11 }
  0xa1   :  { %v166_v15 = vpop.permute.xlu0 %165  ;;  %v132_v17 = vadd.f32 %v509_v9, %v118_v12  ;;  %v379_v12 = vld [vmem:[%s901_s4] sm:$0xff]  ;;  %s636_s4 = scalar_lea.vmem %s486_s13, 256 }
  0xa2   :  { %vm168_vm3 = vcmp.eq.s32.totalorder %v166_v15, %v815_v48  ;;  %594 = vmatprep.subr.mxu1 %v379_v12  ;;  %v538_v15 = vld [vmem:[%s902_s5] ss:$0 sm:$0xff]  ;;  %p637_p0 = scmp.ne.s32.totalorder %s486_s13, %s636_s4  ;;  %p642_p2 = scmp.lt.s32.totalorder %s636_s4, %s636_s4 }
  0xa3   :  { %v138_v47 = vpop.permute.xlu1 %137  ;;  %v515_v29 = vsel %vm168_vm3, 1.0, %v659_v11  ;;  %595 = vmatpush3.msra.mxu1 %v379_v12  ;;  %vm394_vm3 = vcmask 523264  }
  0xa4   :  { %vm140_vm14 = vcmp.eq.s32.totalorder %v138_v47, %v815_v48  ;;  %p643_p3 = por %p642_p2, %p641_p1 }
  0xa5   :  { %v511_v14 = vsel %vm140_vm14, 1.0, %v659_v11 }
  0xa6   :  { %v146_v21 = vadd.f32 %v511_v14, %v132_v17  ;;  %v191_v23 = vpop.permute.xlu0 %190  ;;  %p644_p4 = pnand %p643_p3, %p637_p0 }
  0xa7   :  { %v149_v49 = vpop.permute.xlu1 %148  ;;  %vm195_vm8 = vcmp.eq.s32.totalorder %v191_v23, %v815_v48 }
  0xa8   :  { %vm153_vm2 = vcmp.eq.s32.totalorder %v149_v49, %v815_v48  ;;  %v160_v27 = vadd.f32 %v513_v22, %v146_v21  ;;  %v518_v45 = vsel %vm195_vm8, 1.0, %v659_v11 }
  0xa9   :  { %v512_v28 = vsel %vm153_vm2, 1.0, %v659_v11 }
  0xaa   :  { %v208_v30 = vpop.permute.xlu0 %207  ;;  %v159_v34 = vadd.f32 %v512_v28, %v145_v31  ;;  %v174_v35 = vadd.f32 %v515_v29, %v160_v27 }
  0xab   :  { %vm210_vm9 = vcmp.eq.s32.totalorder %v208_v30, %v815_v48 }
  0xac   :  { %v163_v55 = vpop.permute.xlu1 %162  ;;  %v521_v46 = vsel %vm210_vm9, 1.0, %v659_v11 }
  0xad   :  { %vm167_vm4 = vcmp.eq.s32.totalorder %v163_v55, %v815_v48 }
  0xae   :  { %v514_v32 = vsel %vm167_vm4, 1.0, %v659_v11 }
  0xaf   :  { %v173_v39 = vadd.f32 %v514_v32, %v159_v34  ;;  %v222_v41 = vpop.permute.xlu0 %221 }
  0xb0   :  { %v177_v62 = vpop.permute.xlu1 %176  ;;  %vm224_vm11 = vcmp.eq.s32.totalorder %v222_v41, %v815_v48 }
  0xb1   :  { %vm181_vm6 = vcmp.eq.s32.totalorder %v177_v62, %v815_v48  ;;  %v523_v52 = vsel %vm224_vm11, 1.0, %v659_v11 }
  0xb2   :  { %v516_v37 = vsel %vm181_vm6, 1.0, %v659_v11 }
  0xb3   :  { %v187_v42 = vadd.f32 %v516_v37, %v173_v39 }
  0xb4   :  { %v180_v7 = vpop.permute.xlu1 %179  ;;  %v247_v54 = vpop.permute.xlu0 %246 }
  0xb5   :  { %vm182_vm5 = vcmp.eq.s32.totalorder %v180_v7, %v815_v48  ;;  %v201_v49 = vadd.f32 %v518_v45, %v187_v42  ;;  %vm251_vm15 = vcmp.eq.s32.totalorder %v247_v54, %v815_v48 }
  0xb6   :  { %v517_v33 = vsel %vm182_vm5, 1.0, %v659_v11  ;;  %v526_v0 = vsel %vm251_vm15, 1.0, %v659_v11 }
  0xb7   :  { %v188_v40 = vadd.f32 %v517_v33, %v174_v35 }
  0xb8   :  { %v264_v61 = vpop.permute.xlu0 %263 }
  0xb9   :  { %v194_v19 = vpop.permute.xlu1 %193  ;;  %vm266_vm1 = vcmp.eq.s32.totalorder %v264_v61, %v815_v48 }
  0xba   :  { %vm196_vm7 = vcmp.eq.s32.totalorder %v194_v19, %v815_v48  ;;  %v529_v5 = vsel %vm266_vm1, 1.0, %v659_v11 }
  0xbb   :  { %v519_v38 = vsel %vm196_vm7, 1.0, %v659_v11 }
  0xbc   :  { %v202_v43 = vadd.f32 %v519_v38, %v188_v40 }
  0xbd   :  { %v205_v26 = vpop.permute.xlu1 %204 }
  0xbe   :  { %vm209_vm10 = vcmp.eq.s32.totalorder %v205_v26, %v815_v48  ;;  %v216_v50 = vadd.f32 %v521_v46, %v202_v43 }
  0xbf   :  { %v520_v47 = vsel %vm209_vm10, 1.0, %v659_v11 }
  0xc0   :  { %v215_v55 = vadd.f32 %v520_v47, %v201_v49  ;;  %v230_v58 = vadd.f32 %v523_v52, %v216_v50 }
  0xc2   :  { %v219_v36 = vpop.permute.xlu1 %218 }
  0xc3   :  { %vm223_vm12 = vcmp.eq.s32.totalorder %v219_v36, %v815_v48 }
  0xc4   :  { %v522_v53 = vsel %vm223_vm12, 1.0, %v659_v11 }
  0xc5   :  { %v229_v59 = vadd.f32 %v522_v53, %v215_v55 }
  0xc6   :  { %v233_v44 = vpop.permute.xlu1 %232 }
  0xc7   :  { %vm237_vm13 = vcmp.eq.s32.totalorder %v233_v44, %v815_v48 }
  0xc8   :  { %v524_v56 = vsel %vm237_vm13, 1.0, %v659_v11 }
  0xc9   :  { %v243_v62 = vadd.f32 %v524_v56, %v229_v59 }
  0xca   :  { %v236_v51 = vpop.permute.xlu1 %235 }
  0xcb   :  { %vm238_vm14 = vcmp.eq.s32.totalorder %v236_v51, %v815_v48  ;;  %v257_v4 = vadd.f32 %v526_v0, %v243_v62 }
  0xcc   :  { %v525_v57 = vsel %vm238_vm14, 1.0, %v659_v11 }
  0xcd   :  { %v244_v63 = vadd.f32 %v525_v57, %v230_v58 }
  0xcf   :  { %v250_v60 = vpop.permute.xlu1 %249 }
  0xd0   :  { %vm252_vm0 = vcmp.eq.s32.totalorder %v250_v60, %v815_v48 }
  0xd1   :  { %v527_v1 = vsel %vm252_vm0, 1.0, %v659_v11 }
  0xd2   :  { %v258_v2 = vadd.f32 %v527_v1, %v244_v63 }
  0xd3   :  { %v261_v3 = vpop.permute.xlu1 %260 }
  0xd4   :  { %vm265_vm2 = vcmp.eq.s32.totalorder %v261_v3, %v815_v48  ;;  %v272_v7 = vadd.f32 %v529_v5, %v258_v2 }
  0xd5   :  { %v528_v6 = vsel %vm265_vm2, 1.0, %v659_v11 }
  0xd6   :  { %v271_v8 = vadd.f32 %v528_v6, %v257_v4 }
  0xd8   :  { %v273_v9 = vpack.c.bf16 %v272_v7, %v271_v8 }
  0xda   :  { %577 = vmatmul.mubr.bf16.vlgmr.msra.gmra.mxu0 %v273_v9 }
 0x19a   :  { %v372_v48 = vpop.f32.mrf.mxu0 }
 0x19b   :  { %596 = vmatprep.mubr.msk.f32.mxu1 %vm394_vm3, %v372_v48 }
 0x19c   :  { %v578_v11 = vpop.f32.mrf.mxu0 }
 0x19e   :  { %v375_v13 = vpop.f32.mrf.mxu0 }
 0x19f   :  { %597 = vmatmul.mubr.msk.f32.vlgmr.msra.gmra.mxu1 %vm394_vm3, %v375_v13 }
 0x1a0   :  { %v579_v14 = vpop.f32.mrf.mxu0 }
 0x25f   :  { %v598_v16 = vpop.f32.mrf.mxu1 }
 0x260   :  { %v473_v17 = vadd.f32 %v598_v16, %v538_v15 }
 0x261   :  { %v467_v18 = vpop.f32.mrf.mxu1 }
 0x262   :  { %v477_v19 = vmax.f32 %v473_v17, 0.0  ;;  %v468_v20 = vadd.f32 %v538_v15, %v467_v18 }
 0x264   :  { %479 = vst [vmem:[#allocation2 + $0x8] sm:$0xff] %v477_v19  ;;  %v476_v21 = vmax.f32 %v468_v20, 0.0 }
 0x266   :  { %478 = vst [vmem:[#allocation2] sm:$0xff] %v476_v21 }
 0x267   :  { %647 = shalt.err (!%p644_p4)
}
 0x268   :  { %s669_s14 = smov 128   ;;  %s670_s5 = smov 8  }
 0x269   :  { %491 = dma.vmem_to_hbm [thread:$0]  %s486_s13, 256, %s903_s6, [#allocation3], %s669_s14, %s669_s14, %s670_s5  }
 0x26a   :  { %656 = dma.done.wait [#allocation3], 256  }
 0x26b   :  { %657 = vsyncadd [#allocation3], 4294967040 }
 0x26c   :  { %495 = vsyncpa [#allocation3], 1 }

</bundles_post_ra>
